<compile_context>
chip_gen: v7x
topology: tpu7x:2x2x1
jax: 0.10.0
libtpu: 0.0.40
codegen_flags: <defaults>
</compile_context>

<pallas_src>
import functools

import jax
import jax.numpy as jnp
from jax.experimental import pallas as pl
from jax.experimental.pallas import tpu as pltpu

_NEG_BIG = -1e30  # finite "-inf" for padded logit lanes (must NOT be -inf)


def _round_up(n, m):
    return (n + m - 1) // m * m


def _pad2d(a, rows, cols):
    return jnp.pad(a, ((0, rows - a.shape[0]), (0, cols - a.shape[1])))


def ffnn_kernel(x_ref, w1_ref, b1_ref, w2_ref, b2_ref, w3_ref, b3_ref, o_ref,
                *, matmul_dtype):
    """One batch tile: three fused (Linear -> LogSoftmax(dim=1)) layers.

    Padded feature lanes are handled entirely by the prepared params:
    padded weight rows/cols are 0 and padded bias lanes are -1e30, so padded
    logits sit at ~-1e30, exp() underflows them to 0 in the normalizer, and
    they contribute exactly 0 to the next layer's matmul. No in-kernel masks.
    """

    def linear_logsoftmax(h, w_ref, b_ref):
        # MXU matmul in matmul_dtype (bf16), f32 accumulation; softmax in f32.
        y = jnp.dot(h.astype(matmul_dtype), w_ref[...],
                    preferred_element_type=jnp.float32) + b_ref[...]
        m = jnp.max(y, axis=1, keepdims=True)
        lse = jnp.log(jnp.sum(jnp.exp(y - m), axis=1, keepdims=True)) + m
        return y - lse

    h = linear_logsoftmax(x_ref[...], w1_ref, b1_ref)
    h = linear_logsoftmax(h, w2_ref, b2_ref)
    o_ref[...] = linear_logsoftmax(h, w3_ref, b3_ref).astype(o_ref.dtype)


def prepare_ffnn_params(params, *, matmul_dtype=jnp.bfloat16):
    """One-time param prep (hoisted out of the per-call path).

    PyTorch layout [out, in] -> transposed [in, out], cast to the MXU dtype,
    zero-padded to lane-dense (multiple-of-128) feature dims. Biases are f32
    [1, out_pad] with padded lanes set to -1e30 (the logsoftmax mask).
    """
    w1, b1 = params["w1"], params["b1"]   # [h1, in], [h1]
    w2, b2 = params["w2"], params["b2"]   # [h2, h1], [h2]
    w3, b3 = params["w3"], params["b3"]   # [out, h2], [out]

    in_size = w1.shape[1]
    h1, h2, out_size = w1.shape[0], w2.shape[0], w3.shape[0]
    H1P, H2P, OUTP = (_round_up(n, 128) for n in (h1, h2, out_size))

    def pad_bias(b, n_pad):
        bp = jnp.full((1, n_pad), _NEG_BIG, jnp.float32)
        return bp.at[0, :b.shape[0]].set(b.astype(jnp.float32))

    return {
        "w1p": _pad2d(w1.T.astype(matmul_dtype), in_size, H1P),
        "w2p": _pad2d(w2.T.astype(matmul_dtype), H1P, H2P),
        "w3p": _pad2d(w3.T.astype(matmul_dtype), H2P, OUTP),
        "b1p": pad_bias(b1, H1P),
        "b2p": pad_bias(b2, H2P),
        "b3p": pad_bias(b3, OUTP),
        "in_size": in_size,
        "out_size": out_size,
    }


def multiclass_ffnn_forward(x, prepared, *, block_b=1024):
    """x: [B, input_size] float. prepared: output of prepare_ffnn_params."""
    B, in_size = x.shape
    assert in_size == prepared["in_size"]
    out_size = prepared["out_size"]
    OUTP = prepared["w3p"].shape[1]
    matmul_dtype = prepared["w1p"].dtype

    # Batch tile: multiple of 16 (bf16 sublane packing), capped at block_b.
    TB = min(block_b, _round_up(B, 16))
    # v7x megacore: guarantee >= 2 grid steps when the batch allows it so the
    # "parallel" axis can split across the two TensorCores.
    if B > 16 and _round_up(B, TB) // TB < 2:
        TB = _round_up((TB + 1) // 2, 16)
    B_pad = _round_up(B, TB)
    num_tiles = B_pad // TB

    # Activation stream in bf16: halves HBM read bytes, drops an in-kernel cast.
    x_p = jnp.pad(x.astype(matmul_dtype), ((0, B_pad - B), (0, 0)))

    # Weights/biases: same block every grid step -> DMA'd once, VMEM-resident.
    # (<200 KB total; if hidden sizes grow into the thousands, add
    #  pltpu.CompilerParams(vmem_limit_bytes=...) here.)
    resident = lambda a: pl.BlockSpec(a.shape, lambda i: (0, 0))

    kernel = functools.partial(ffnn_kernel, matmul_dtype=matmul_dtype)

    out_padded = pl.pallas_call(
        kernel,
        out_shape=jax.ShapeDtypeStruct((B_pad, OUTP), jnp.float32),
        grid=(num_tiles,),
        in_specs=[
            pl.BlockSpec((TB, in_size), lambda i: (i, 0)),   # activation stream
            resident(prepared["w1p"]), resident(prepared["b1p"]),
            resident(prepared["w2p"]), resident(prepared["b2p"]),
            resident(prepared["w3p"]), resident(prepared["b3p"]),
        ],
        out_specs=pl.BlockSpec((TB, OUTP), lambda i: (i, 0)),
        compiler_params=pltpu.CompilerParams(
            dimension_semantics=("parallel",)),   # megacore batch split on v7x
    )(x_p, prepared["w1p"], prepared["b1p"], prepared["w2p"], prepared["b2p"],
      prepared["w3p"], prepared["b3p"])

    return out_padded[:B, :out_size]


def reference_forward_f32(x, params):
    """Exact f32 PyTorch-semantics reference."""
    def lin_lsm(h, w, b):
        y = h @ w.T + b
        m = jnp.max(y, axis=1, keepdims=True)
        return y - (jnp.log(jnp.sum(jnp.exp(y - m), axis=1, keepdims=True)) + m)

    h = lin_lsm(x, params["w1"], params["b1"])
    h = lin_lsm(h, params["w2"], params["b2"])
    return lin_lsm(h, params["w3"], params["b3"])


def reference_forward_mirror(x, params, dtype):
    """Mirrors the kernel's compute path: dtype matmul inputs, f32 accumulation."""
    def lin_lsm(h, w, b):
        y = jnp.dot(h.astype(dtype), w.T.astype(dtype),
                    preferred_element_type=jnp.float32) + b
        m = jnp.max(y, axis=1, keepdims=True)
        return y - (jnp.log(jnp.sum(jnp.exp(y - m), axis=1, keepdims=True)) + m)

    h = lin_lsm(x.astype(dtype), params["w1"], params["b1"])
    h = lin_lsm(h, params["w2"], params["b2"])
    return lin_lsm(h, params["w3"], params["b3"])


if __name__ == "__main__":
    # Small shapes consistent with the module: Linear chain in -> h1 -> h2 -> out.
    B, input_size, hidden_1, hidden_2, output_size = 2, 32, 64, 32, 8

    key = jax.random.PRNGKey(0)
    kx, k1, k2, k3, kb1, kb2, kb3 = jax.random.split(key, 7)

    x = jax.random.normal(kx, (B, input_size), dtype=jnp.float32)

    # Deterministic parameter init (PyTorch [out_features, in_features] layout).
    params = {
        "w1": 0.1 * jax.random.normal(k1, (hidden_1, input_size), jnp.float32),
        "b1": 0.1 * jax.random.normal(kb1, (hidden_1,), jnp.float32),
        "w2": 0.1 * jax.random.normal(k2, (hidden_2, hidden_1), jnp.float32),
        "b2": 0.1 * jax.random.normal(kb2, (hidden_2,), jnp.float32),
        "w3": 0.1 * jax.random.normal(k3, (output_size, hidden_2), jnp.float32),
        "b3": 0.1 * jax.random.normal(kb3, (output_size,), jnp.float32),
    }

    # One-time param prep (transpose / cast / pad / bias-mask), then forward.
    prepared = prepare_ffnn_params(params)
    out = multiclass_ffnn_forward(x, prepared)
    out = jax.block_until_ready(out)
    assert out.shape == (B, output_size)

    # 1) Matches a reference that mirrors the kernel's bf16-matmul/f32-accum path.
    ref_mirror = reference_forward_mirror(x, params, jnp.bfloat16)
    assert jnp.allclose(out, ref_mirror, atol=1e-4, rtol=1e-4), "mismatch vs mirrored reference"

    # 2) Close to the full-f32 PyTorch-semantics reference (bf16 matmul rounding only).
    ref_f32 = reference_forward_f32(x, params)
    assert jnp.allclose(out, ref_f32, atol=5e-2, rtol=0.0), "mismatch vs f32 reference"

    # 3) Each row of a log-softmax output should logsumexp to ~0.
    assert jnp.allclose(jax.scipy.special.logsumexp(out, axis=1),
                        jnp.zeros((B,)), atol=1e-4)

    print("KERNEL_OK")
</pallas_src>

<mosaic_0001>
module attributes {stable_mosaic.version = 11 : i64} {
  func.func @ffnn_kernel(%arg0: i32, %arg1: memref<16x32xbf16, #tpu.memory_space<vmem>>, %arg2: memref<32x128xbf16, #tpu.memory_space<vmem>>, %arg3: memref<1x128xf32, #tpu.memory_space<vmem>>, %arg4: memref<128x128xbf16, #tpu.memory_space<vmem>>, %arg5: memref<1x128xf32, #tpu.memory_space<vmem>>, %arg6: memref<128x128xbf16, #tpu.memory_space<vmem>>, %arg7: memref<1x128xf32, #tpu.memory_space<vmem>>, %arg8: memref<16x128xf32, #tpu.memory_space<vmem>>) attributes {dimension_semantics = [#tpu.dimension_semantics<parallel>], iteration_bounds = array<i64: 1>, scalar_prefetch = 0 : i64, scratch_operands = 0 : i64, tpu.core_type = #tpu.core_type<tc>, window_params = [{transform_indices = @transform_0, window_bounds = array<i64: 16, 32>}, {pipeline_mode = #tpu.pipeline_mode<synchronous>, transform_indices = @transform_1, window_bounds = array<i64: 32, 128>}, {pipeline_mode = #tpu.pipeline_mode<synchronous>, transform_indices = @transform_2, window_bounds = array<i64: 1, 128>}, {pipeline_mode = #tpu.pipeline_mode<synchronous>, transform_indices = @transform_3, window_bounds = array<i64: 128, 128>}, {pipeline_mode = #tpu.pipeline_mode<synchronous>, transform_indices = @transform_4, window_bounds = array<i64: 1, 128>}, {pipeline_mode = #tpu.pipeline_mode<synchronous>, transform_indices = @transform_5, window_bounds = array<i64: 128, 128>}, {pipeline_mode = #tpu.pipeline_mode<synchronous>, transform_indices = @transform_6, window_bounds = array<i64: 1, 128>}, {transform_indices = @transform_7, window_bounds = array<i64: 16, 128>}]} {
    %c0 = arith.constant 0 : index
    %c0_0 = arith.constant 0 : index
    %0 = vector.load %arg1[%c0, %c0_0] : memref<16x32xbf16, #tpu.memory_space<vmem>>, vector<16x32xbf16>
    %c0_1 = arith.constant 0 : index
    %c0_2 = arith.constant 0 : index
    %1 = vector.load %arg2[%c0_1, %c0_2] : memref<32x128xbf16, #tpu.memory_space<vmem>>, vector<32x128xbf16>
    %cst = arith.constant dense<0.000000e+00> : vector<16x128xf32>
    %2 = tpu.matmul %0, %1, %cst {dimension_numbers = #tpu.dot_dimension_numbers<[1], [0], [0], [1], [0, 0, 1, 1], [], []>} : vector<16x32xbf16>, vector<32x128xbf16>, vector<16x128xf32> -> vector<16x128xf32>
    %c0_3 = arith.constant 0 : index
    %c0_4 = arith.constant 0 : index
    %3 = vector.load %arg3[%c0_3, %c0_4] : memref<1x128xf32, #tpu.memory_space<vmem>>, vector<1x128xf32>
    %4 = vector.broadcast %3 : vector<1x128xf32> to vector<16x128xf32>
    %5 = arith.addf %2, %4 : vector<16x128xf32>
    %cst_5 = arith.constant dense<0xFF800000> : vector<16xf32>
    %6 = vector.multi_reduction <maximumf>, %5, %cst_5 [1] : vector<16x128xf32> to vector<16xf32>
    %7 = vector.shape_cast %6 : vector<16xf32> to vector<16x1xf32>
    %8 = vector.broadcast %7 : vector<16x1xf32> to vector<16x128xf32>
    %9 = arith.subf %5, %8 : vector<16x128xf32>
    %10 = math.exp %9 : vector<16x128xf32>
    %cst_6 = arith.constant dense<0.000000e+00> : vector<16xf32>
    %11 = vector.multi_reduction <add>, %10, %cst_6 [1] : vector<16x128xf32> to vector<16xf32>
    %12 = vector.shape_cast %11 : vector<16xf32> to vector<16x1xf32>
    %13 = math.log %12 : vector<16x1xf32>
    %14 = arith.addf %13, %7 : vector<16x1xf32>
    %15 = vector.broadcast %14 : vector<16x1xf32> to vector<16x128xf32>
    %16 = arith.subf %5, %15 : vector<16x128xf32>
    %17 = arith.truncf %16 : vector<16x128xf32> to vector<16x128xbf16>
    %c0_7 = arith.constant 0 : index
    %c0_8 = arith.constant 0 : index
    %18 = vector.load %arg4[%c0_7, %c0_8] : memref<128x128xbf16, #tpu.memory_space<vmem>>, vector<128x128xbf16>
    %cst_9 = arith.constant dense<0.000000e+00> : vector<16x128xf32>
    %19 = tpu.matmul %17, %18, %cst_9 {dimension_numbers = #tpu.dot_dimension_numbers<[1], [0], [0], [1], [0, 0, 1, 1], [], []>} : vector<16x128xbf16>, vector<128x128xbf16>, vector<16x128xf32> -> vector<16x128xf32>
    %c0_10 = arith.constant 0 : index
    %c0_11 = arith.constant 0 : index
    %20 = vector.load %arg5[%c0_10, %c0_11] : memref<1x128xf32, #tpu.memory_space<vmem>>, vector<1x128xf32>
    %21 = vector.broadcast %20 : vector<1x128xf32> to vector<16x128xf32>
    %22 = arith.addf %19, %21 : vector<16x128xf32>
    %cst_12 = arith.constant dense<0xFF800000> : vector<16xf32>
    %23 = vector.multi_reduction <maximumf>, %22, %cst_12 [1] : vector<16x128xf32> to vector<16xf32>
    %24 = vector.shape_cast %23 : vector<16xf32> to vector<16x1xf32>
    %25 = vector.broadcast %24 : vector<16x1xf32> to vector<16x128xf32>
    %26 = arith.subf %22, %25 : vector<16x128xf32>
    %27 = math.exp %26 : vector<16x128xf32>
    %cst_13 = arith.constant dense<0.000000e+00> : vector<16xf32>
    %28 = vector.multi_reduction <add>, %27, %cst_13 [1] : vector<16x128xf32> to vector<16xf32>
    %29 = vector.shape_cast %28 : vector<16xf32> to vector<16x1xf32>
    %30 = math.log %29 : vector<16x1xf32>
    %31 = arith.addf %30, %24 : vector<16x1xf32>
    %32 = vector.broadcast %31 : vector<16x1xf32> to vector<16x128xf32>
    %33 = arith.subf %22, %32 : vector<16x128xf32>
    %34 = arith.truncf %33 : vector<16x128xf32> to vector<16x128xbf16>
    %c0_14 = arith.constant 0 : index
    %c0_15 = arith.constant 0 : index
    %35 = vector.load %arg6[%c0_14, %c0_15] : memref<128x128xbf16, #tpu.memory_space<vmem>>, vector<128x128xbf16>
    %cst_16 = arith.constant dense<0.000000e+00> : vector<16x128xf32>
    %36 = tpu.matmul %34, %35, %cst_16 {dimension_numbers = #tpu.dot_dimension_numbers<[1], [0], [0], [1], [0, 0, 1, 1], [], []>} : vector<16x128xbf16>, vector<128x128xbf16>, vector<16x128xf32> -> vector<16x128xf32>
    %c0_17 = arith.constant 0 : index
    %c0_18 = arith.constant 0 : index
    %37 = vector.load %arg7[%c0_17, %c0_18] : memref<1x128xf32, #tpu.memory_space<vmem>>, vector<1x128xf32>
    %38 = vector.broadcast %37 : vector<1x128xf32> to vector<16x128xf32>
    %39 = arith.addf %36, %38 : vector<16x128xf32>
    %cst_19 = arith.constant dense<0xFF800000> : vector<16xf32>
    %40 = vector.multi_reduction <maximumf>, %39, %cst_19 [1] : vector<16x128xf32> to vector<16xf32>
    %41 = vector.shape_cast %40 : vector<16xf32> to vector<16x1xf32>
    %42 = vector.broadcast %41 : vector<16x1xf32> to vector<16x128xf32>
    %43 = arith.subf %39, %42 : vector<16x128xf32>
    %44 = math.exp %43 : vector<16x128xf32>
    %cst_20 = arith.constant dense<0.000000e+00> : vector<16xf32>
    %45 = vector.multi_reduction <add>, %44, %cst_20 [1] : vector<16x128xf32> to vector<16xf32>
    %46 = vector.shape_cast %45 : vector<16xf32> to vector<16x1xf32>
    %47 = math.log %46 : vector<16x1xf32>
    %48 = arith.addf %47, %41 : vector<16x1xf32>
    %49 = vector.broadcast %48 : vector<16x1xf32> to vector<16x128xf32>
    %50 = arith.subf %39, %49 : vector<16x128xf32>
    %c0_21 = arith.constant 0 : index
    %c0_22 = arith.constant 0 : index
    %51 = vector.load %arg8[%c0_21, %c0_22] : memref<16x128xf32, #tpu.memory_space<vmem>>, vector<16x128xf32>
    tpu.vector_store %arg8[%c0_21, %c0_22], %50 {strides = array<i32>} : memref<16x128xf32, #tpu.memory_space<vmem>>, vector<16x128xf32>,
    return
  }
  func.func @transform_0(%arg0: i32) -> (i32, i32) {
    %c0_i32 = arith.constant 0 : i32
    %c0_i32_0 = arith.constant 0 : i32
    return %arg0, %c0_i32 : i32, i32
  }
  func.func @transform_1(%arg0: i32) -> (i32, i32) {
    %c0_i32 = arith.constant 0 : i32
    %c0_i32_0 = arith.constant 0 : i32
    %c0_i32_1 = arith.constant 0 : i32
    return %c0_i32, %c0_i32_0 : i32, i32
  }
  func.func @transform_2(%arg0: i32) -> (i32, i32) {
    %c0_i32 = arith.constant 0 : i32
    %c0_i32_0 = arith.constant 0 : i32
    %c0_i32_1 = arith.constant 0 : i32
    return %c0_i32, %c0_i32_0 : i32, i32
  }
  func.func @transform_3(%arg0: i32) -> (i32, i32) {
    %c0_i32 = arith.constant 0 : i32
    %c0_i32_0 = arith.constant 0 : i32
    %c0_i32_1 = arith.constant 0 : i32
    return %c0_i32, %c0_i32_0 : i32, i32
  }
  func.func @transform_4(%arg0: i32) -> (i32, i32) {
    %c0_i32 = arith.constant 0 : i32
    %c0_i32_0 = arith.constant 0 : i32
    %c0_i32_1 = arith.constant 0 : i32
    return %c0_i32, %c0_i32_0 : i32, i32
  }
  func.func @transform_5(%arg0: i32) -> (i32, i32) {
    %c0_i32 = arith.constant 0 : i32
    %c0_i32_0 = arith.constant 0 : i32
    %c0_i32_1 = arith.constant 0 : i32
    return %c0_i32, %c0_i32_0 : i32, i32
  }
  func.func @transform_6(%arg0: i32) -> (i32, i32) {
    %c0_i32 = arith.constant 0 : i32
    %c0_i32_0 = arith.constant 0 : i32
    %c0_i32_1 = arith.constant 0 : i32
    return %c0_i32, %c0_i32_0 : i32, i32
  }
  func.func @transform_7(%arg0: i32) -> (i32, i32) {
    %c0_i32 = arith.constant 0 : i32
    %c0_i32_0 = arith.constant 0 : i32
    return %arg0, %c0_i32 : i32, i32
  }
}

</mosaic_0001>

<bundles_post_ra>
// kernel: tpu_custom_call.1
= control target key start
LH: loop header
LB: loop body
LE: loop exit
PB: predicated region body
PF: predicated region fallthrough
CT: control target
= control target key end

     0   :  { %12 = vsyncpa [#allocation3], 0  ;;  %s902_s0 = inlined_call_operand.hbm [shape: bf16[16,32], index: 0, kind: input, shape index: {}]   ;;  %s903_s1 = inlined_call_operand.hbm [shape: bf16[32,128], index: 1, kind: input, shape index: {}]   ;;  %s904_s2 = inlined_call_operand.vmem [shape: f32[1,128], index: 2, kind: input, shape index: {}]   ;;  %s905_s3 = inlined_call_operand.hbm [shape: bf16[128,128], index: 3, kind: input, shape index: {}]   ;;  %s906_s4 = inlined_call_operand.vmem [shape: f32[1,128], index: 4, kind: input, shape index: {}]   ;;  %s907_s5 = inlined_call_operand.hbm [shape: bf16[128,128], index: 5, kind: input, shape index: {}]   ;;  %s908_s6 = inlined_call_operand.vmem [shape: f32[1,128], index: 6, kind: input, shape index: {}]   ;;  %s909_s7 = inlined_call_operand.hbm [shape: f32[16,128], index: 7, kind: output, shape index: {}]  }
   0x1   :  { %13 = vsyncpa [#allocation6], 0 }
   0x2   :  { %14 = vsyncpa [#allocation9], 0 }
   0x3   :  { %15 = vsyncpa [#allocation4], 0  ;;  %s735_s24 = smov [#allocation5]   ;;  %s736_s26 = smov [#allocation2]  }
   0x4   :  { %s33_s25 = sshll.u32 %s735_s24, 4  ;;  %s21_s27 = sshll.u32 %s736_s26, 4  ;;  %s34_s25 = int_to_ptr.vmem [resolvable:$true] %s33_s25  ;;  %s786_s27 = int_to_ptr.vmem [resolvable:$true] %s21_s27 }
   0x5   :  { %s617_s30 = scalar_lea.hbm %s903_s1, 256 }
   0x6   :  { %p618_p0 = scmp.ne.s32.totalorder %s903_s1, %s617_s30  ;;  %p621_p1 = scmp.lt.u32.totalorder %s617_s30, %s903_s1 }
   0x8   :  { %p623_p2 = pnand %p621_p1, %p618_p0 }
   0xa   :  { %626 = shalt.err (!%p623_p2)
}
   0xb   :  { %s627_s12 = scalar_lea.vmem %s34_s25, 256  ;;  %p632_p4 = scmp.lt.s32.totalorder %s34_s25, %s34_s25 }
   0xc   :  { %p628_p3 = scmp.ne.s32.totalorder %s34_s25, %s627_s12  ;;  %p633_p5 = scmp.lt.s32.totalorder %s627_s12, %s627_s12 }
   0xe   :  { %p634_p6 = por %p633_p5, %p632_p4 }
  0x10   :  { %p635_p7 = pnand %p634_p6, %p628_p3 }
  0x12   :  { %638 = shalt.err (!%p635_p7)
}
  0x13   :  { %s737_s13 = smov 64   ;;  %s738_s14 = smov 4  }
  0x14   :  { %39 = dma.hbm_to_vmem [thread:$0]  %s903_s1, 256, %s34_s25, [#allocation6], %s737_s13, %s737_s13, %s738_s14  }
  0x15   :  { %s639_s19 = scalar_lea.hbm %s902_s0, 128 }
  0x16   :  { %p640_p8 = scmp.ne.s32.totalorder %s902_s0, %s639_s19  ;;  %p643_p9 = scmp.lt.u32.totalorder %s639_s19, %s902_s0 }
  0x18   :  { %p645_p10 = pnand %p643_p9, %p640_p8 }
  0x1a   :  { %648 = shalt.err (!%p645_p10)
}
  0x1b   :  { %s649_s24 = scalar_lea.vmem %s786_s27, 128  ;;  %p654_p12 = scmp.lt.s32.totalorder %s786_s27, %s786_s27 }
  0x1c   :  { %p650_p11 = scmp.ne.s32.totalorder %s786_s27, %s649_s24  ;;  %p655_p13 = scmp.lt.s32.totalorder %s649_s24, %s649_s24 }
  0x1e   :  { %p656_p0 = por %p655_p13, %p654_p12 }
  0x20   :  { %p657_p1 = pnand %p656_p0, %p650_p11 }
  0x22   :  { %660 = shalt.err (!%p657_p1)
}
  0x23   :  { %27 = dma.hbm_to_vmem [thread:$0]  %s902_s0, 128, %s786_s27, [#allocation3], %s737_s13, %s737_s13, %s738_s14  }
  0x24   :  { %s739_s26 = smov [#allocation7]   ;;  %s740_s29 = smov [#allocation8]  }
  0x25   :  { %s47_s28 = sshll.u32 %s739_s26, 4  ;;  %s61_s30 = sshll.u32 %s740_s29, 4  ;;  %s48_s28 = int_to_ptr.vmem [resolvable:$true] %s47_s28  ;;  %s823_s30 = int_to_ptr.vmem [resolvable:$true] %s61_s30 }
  0x26   :  { %s661_s10 = scalar_lea.hbm %s905_s3, 1024 }
  0x27   :  { %p662_p2 = scmp.ne.s32.totalorder %s905_s3, %s661_s10  ;;  %p665_p3 = scmp.lt.u32.totalorder %s661_s10, %s905_s3 }
  0x29   :  { %p667_p4 = pnand %p665_p3, %p662_p2 }
  0x2b   :  { %670 = shalt.err (!%p667_p4)
}
  0x2c   :  { %s671_s0 = scalar_lea.vmem %s48_s28, 1024  ;;  %p676_p6 = scmp.lt.s32.totalorder %s48_s28, %s48_s28 }
  0x2d   :  { %p672_p5 = scmp.ne.s32.totalorder %s48_s28, %s671_s0  ;;  %p677_p7 = scmp.lt.s32.totalorder %s671_s0, %s671_s0 }
  0x2f   :  { %p678_p8 = por %p677_p7, %p676_p6 }
  0x31   :  { %p679_p9 = pnand %p678_p8, %p672_p5 }
  0x33   :  { %682 = shalt.err (!%p679_p9)
}
  0x34   :  { %53 = dma.hbm_to_vmem [thread:$0]  %s905_s3, 1024, %s48_s28, [#allocation6], %s737_s13, %s737_s13, %s738_s14  }
  0x35   :  { %s683_s20 = scalar_lea.hbm %s907_s5, 1024 }
  0x36   :  { %p684_p10 = scmp.ne.s32.totalorder %s907_s5, %s683_s20  ;;  %p687_p11 = scmp.lt.u32.totalorder %s683_s20, %s907_s5 }
  0x38   :  { %p689_p12 = pnand %p687_p11, %p684_p10 }
  0x3a   :  { %692 = shalt.err (!%p689_p12)
}
  0x3b   :  { %s693_s1 = scalar_lea.vmem %s823_s30, 1024  ;;  %p698_p0 = scmp.lt.s32.totalorder %s823_s30, %s823_s30 }
  0x3c   :  { %p694_p13 = scmp.ne.s32.totalorder %s823_s30, %s693_s1  ;;  %p699_p1 = scmp.lt.s32.totalorder %s693_s1, %s693_s1 }
  0x3e   :  { %p700_p2 = por %p699_p1, %p698_p0 }
  0x40   :  { %p701_p3 = pnand %p700_p2, %p694_p13 }
  0x42   :  { %704 = shalt.err (!%p701_p3)
}
  0x43   :  { %67 = dma.hbm_to_vmem [thread:$0]  %s907_s5, 1024, %s823_s30, [#allocation9], %s737_s13, %s737_s13, %s738_s14  }
  0x44   :  { %727 = dma.done.wait [#allocation3], 128  }
  0x45   :  { %728 = vsyncadd [#allocation3], 4294967168 }
  0x46   :  { %729 = dma.done.wait [#allocation6], 1280  }
  0x47   :  { %730 = vsyncadd [#allocation6], 4294966016 }
  0x48   :  { %731 = dma.done.wait [#allocation9], 1024  }
  0x49   :  { %732 = vsyncadd [#allocation9], 4294966272  ;;  %v741_v0 = vmov 0.0   ;;  %vm742_vm0 = vmmov 0   ;;  %v574_v1 = vld [vmem:[#allocation5] sm:$0xff]   ;;  %v575_v2 = vld [vmem:[#allocation5 + $0x8] sm:$0xff]  }
  0x4a   :  { %515 = vmatprep.subr.bf16.mxu0 %v741_v0  ;;  %519 = vmatprep.mubr.msk.bf16.mxu0 %vm742_vm0, %v741_v0  ;;  %v576_v3 = vld [vmem:[#allocation2] sm:$0xff]   ;;  %vm113_vm1 = vcmask 261120   ;;  %v577_v11 = vld [vmem:[#allocation7] sm:$0xff]   ;;  %v579_v21 = vld [vmem:[#allocation7 + $0x10] sm:$0xff]  }
  0x4b   :  { %523 = vmatprep.subr.bf16.mxu1 %v741_v0  ;;  %539 = vmatprep.mubr.msk.bf16.mxu1 %vm742_vm0, %v741_v0  ;;  %v471_v4 = vld [vmem:[%s904_s2] ss:$0 sm:$0xff]  ;;  %v580_v22 = vld [vmem:[#allocation7 + $0x18] sm:$0xff]   ;;  %v581_v23 = vld [vmem:[#allocation7 + $0x20] sm:$0xff]  }
  0x4c   :  { %516 = vmatpush3.bf16.msra.mxu0 %v574_v1  ;;  %524 = vmatpush3.bf16.msra.mxu1 %v577_v11  ;;  %v578_v12 = vld [vmem:[#allocation7 + $0x8] sm:$0xff]   ;;  %v583_v25 = vld [vmem:[#allocation7 + $0x30] sm:$0xff]   ;;  %v584_v26 = vld [vmem:[#allocation7 + $0x38] sm:$0xff]  }
  0x4d   :  { %517 = vmatprep.subr.bf16.mxu0 %v741_v0  ;;  %525 = vmatprep.subr.bf16.mxu1 %v741_v0  ;;  %v582_v24 = vld [vmem:[#allocation7 + $0x28] sm:$0xff]   ;;  %v585_v45 = vld [vmem:[#allocation8] sm:$0xff]   ;;  %v587_v47 = vld [vmem:[#allocation8 + $0x10] sm:$0xff]  }
  0x4e   :  { %v476_v38 = vld [vmem:[%s906_s4] ss:$0 sm:$0xff]  ;;  %v588_v56 = vld [vmem:[#allocation8 + $0x18] sm:$0xff]   ;;  %v589_v57 = vld [vmem:[#allocation8 + $0x20] sm:$0xff]  }
  0x4f   :  { %v586_v46 = vld [vmem:[#allocation8 + $0x8] sm:$0xff]   ;;  %v591_v59 = vld [vmem:[#allocation8 + $0x30] sm:$0xff]   ;;  %v592_v60 = vld [vmem:[#allocation8 + $0x38] sm:$0xff]  }
  0x50   :  { %518 = vmatpush3.bf16.msra.mxu0 %v575_v2  ;;  %526 = vmatpush3.bf16.msra.mxu1 %v578_v12  ;;  %v590_v58 = vld [vmem:[#allocation8 + $0x28] sm:$0xff]  }
  0x51   :  { %543 = vmatprep.subr.bf16.mxu0 %v741_v0  ;;  %527 = vmatprep.subr.bf16.mxu1 %v741_v0 }
  0x53   :  { %520 = vmatmul.mubr.msk.bf16.vlgmr.msra.gmra.mrb[0].mxu0 %vm113_vm1, %v576_v3 }
  0x54   :  { %559 = vmatprep.mubr.msk.bf16.mxu0 %vm742_vm0, %v741_v0  ;;  %528 = vmatpush3.bf16.msra.mxu1 %v579_v21 }
  0x55   :  { %529 = vmatprep.subr.bf16.mxu1 %v741_v0  ;;  %544 = vmatpush3.bf16.msra.mxu0 %v585_v45 }
  0x56   :  { %545 = vmatprep.subr.bf16.mxu0 %v741_v0 }
  0x58   :  { %530 = vmatpush3.bf16.msra.mxu1 %v580_v22 }
  0x59   :  { %531 = vmatprep.subr.bf16.mxu1 %v741_v0  ;;  %546 = vmatpush3.bf16.msra.mxu0 %v586_v46 }
  0x5a   :  { %547 = vmatprep.subr.bf16.mxu0 %v741_v0 }
  0x5c   :  { %532 = vmatpush3.bf16.msra.mxu1 %v581_v23 }
  0x5d   :  { %533 = vmatprep.subr.bf16.mxu1 %v741_v0  ;;  %548 = vmatpush3.bf16.msra.mxu0 %v587_v47 }
  0x5e   :  { %549 = vmatprep.subr.bf16.mxu0 %v741_v0 }
  0x60   :  { %534 = vmatpush3.bf16.msra.mxu1 %v582_v24 }
  0x61   :  { %535 = vmatprep.subr.bf16.mxu1 %v741_v0  ;;  %550 = vmatpush3.bf16.msra.mxu0 %v588_v56 }
  0x62   :  { %551 = vmatprep.subr.bf16.mxu0 %v741_v0 }
  0x64   :  { %536 = vmatpush3.bf16.msra.mxu1 %v583_v25 }
  0x65   :  { %537 = vmatprep.subr.bf16.mxu1 %v741_v0  ;;  %552 = vmatpush3.bf16.msra.mxu0 %v589_v57 }
  0x66   :  { %553 = vmatprep.subr.bf16.mxu0 %v741_v0 }
  0x68   :  { %538 = vmatpush3.bf16.msra.mxu1 %v584_v26 }
  0x69   :  { %554 = vmatpush3.bf16.msra.mxu0 %v590_v58 }
  0x6a   :  { %555 = vmatprep.subr.bf16.mxu0 %v741_v0 }
  0x6d   :  { %556 = vmatpush3.bf16.msra.mxu0 %v591_v59 }
  0x6e   :  { %557 = vmatprep.subr.bf16.mxu0 %v741_v0  ;;  %v485_v0 = vld [vmem:[%s908_s6] ss:$0 sm:$0xff]  ;;  %s743_s6 = smov [#allocation10]  }
  0x6f   :  { %s457_s28 = sshll.u32 %s743_s6, 4  ;;  %s458_s28 = int_to_ptr.vmem [resolvable:$true] %s457_s28 }
  0x70   :  { %s705_s29 = scalar_lea.vmem %s458_s28, 256  ;;  %p710_p5 = scmp.lt.s32.totalorder %s458_s28, %s458_s28 }
  0x71   :  { %558 = vmatpush3.bf16.msra.mxu0 %v592_v60  ;;  %p706_p4 = scmp.ne.s32.totalorder %s458_s28, %s705_s29  ;;  %p711_p6 = scmp.lt.s32.totalorder %s705_s29, %s705_s29 }
  0x73   :  { %p712_p7 = por %p711_p6, %p710_p5 }
  0x75   :  { %p713_p8 = pnand %p712_p7, %p706_p4 }
 0x126   :  { %v151_v5 = vpop.f32.mrb[0].mxu0 }
 0x127   :  { %v152_v6 = vadd.f32 %v471_v4, %v151_v5  ;;  %v521_v7 = vpop.f32.mrb[1].mxu0 }
 0x128   :  { %v154_v8 = vpop.f32.mrb[2].mxu0 }
 0x129   :  { %158 = vmax.xlane.f32.xlu0 %v152_v6  ;;  %v522_v9 = vpop.f32.mrb[3].mxu0  ;;  %v155_v10 = vadd.f32 %v471_v4, %v154_v8 }
 0x12d   :  { %160 = vmax.xlane.f32.xlu0 %v155_v10 }
 0x1b6   :  { %v159_v13 = vpop.xlane.xlu0 %158 }
 0x1b7   :  { %v162_v14 = vsub.f32 %v152_v6, %v159_v13 }
 0x1b9   :  { %v164_v15 = vmul.f32 1.442695, %v162_v14 }
 0x1ba   :  { %v161_v16 = vpop.xlane.xlu0 %160 }
 0x1bb   :  { %v163_v17 = vsub.f32 %v155_v10, %v161_v16  ;;  %593 = vpow2.f32 %v164_v15 }
 0x1bd   :  { %v166_v18 = vmul.f32 1.442695, %v163_v17 }
 0x1bf   :  { %595 = vpow2.f32 %v166_v18 }
 0x1c5   :  { %v594_v19 = vpop.eup %593 }
 0x1c6   :  { %168 = vadd.xlane.f32.xlu1 %v594_v19 }
 0x1c9   :  { %v596_v20 = vpop.eup %595 }
 0x1ca   :  { %170 = vadd.xlane.f32.xlu1 %v596_v20 }
 0x253   :  { %v169_v27 = vpop.xlane.xlu1 %168 }
 0x254   :  { %597 = vlog2.f32 %v169_v27 }
 0x257   :  { %v171_v28 = vpop.xlane.xlu1 %170 }
 0x258   :  { %599 = vlog2.f32 %v171_v28 }
 0x25e   :  { %v598_v29 = vpop.eup %597 }
 0x25f   :  { %v173_v30 = vmul.f32 0.6931472, %v598_v29 }
 0x261   :  { %v176_v32 = vadd.f32 %v173_v30, %v159_v13 }
 0x262   :  { %v600_v31 = vpop.eup %599 }
 0x263   :  { %v175_v33 = vmul.f32 0.6931472, %v600_v31  ;;  %v178_v35 = vsub.f32 %v152_v6, %v176_v32 }
 0x265   :  { %v177_v34 = vadd.f32 %v175_v33, %v161_v16 }
 0x267   :  { %v179_v36 = vsub.f32 %v155_v10, %v177_v34 }
 0x269   :  { %v180_v37 = vpack.c.bf16 %v179_v36, %v178_v35 }
 0x26b   :  { %540 = vmatmul.mubr.bf16.vlgmr.msra.gmra.mrb[0].mxu1 %v180_v37 }
 0x33e   :  { %v286_v39 = vpop.f32.mrb[0].mxu1 }
 0x33f   :  { %v287_v40 = vadd.f32 %v476_v38, %v286_v39  ;;  %v541_v41 = vpop.f32.mrb[1].mxu1 }
 0x340   :  { %v289_v42 = vpop.f32.mrb[2].mxu1 }
 0x341   :  { %v290_v43 = vadd.f32 %v476_v38, %v289_v42  ;;  %293 = vmax.xlane.f32.xlu0 %v287_v40  ;;  %v542_v44 = vpop.f32.mrb[3].mxu1 }
 0x343   :  { %295 = vmax.xlane.f32.xlu1 %v290_v43 }
 0x3ce   :  { %v294_v48 = vpop.xlane.xlu0 %293 }
 0x3cf   :  { %v297_v49 = vsub.f32 %v287_v40, %v294_v48 }
 0x3d0   :  { %v296_v50 = vpop.xlane.xlu1 %295 }
 0x3d1   :  { %v299_v51 = vmul.f32 1.442695, %v297_v49  ;;  %v298_v52 = vsub.f32 %v290_v43, %v296_v50 }
 0x3d3   :  { %601 = vpow2.f32 %v299_v51  ;;  %v301_v53 = vmul.f32 1.442695, %v298_v52 }
 0x3d5   :  { %603 = vpow2.f32 %v301_v53 }
 0x3dd   :  { %v602_v54 = vpop.eup %601 }
 0x3de   :  { %303 = vadd.xlane.f32.xlu0 %v602_v54 }
 0x3df   :  { %v604_v55 = vpop.eup %603 }
 0x3e0   :  { %305 = vadd.xlane.f32.xlu1 %v604_v55 }
 0x46b   :  { %v304_v61 = vpop.xlane.xlu0 %303 }
 0x46c   :  { %605 = vlog2.f32 %v304_v61 }
 0x46d   :  { %v306_v62 = vpop.xlane.xlu1 %305 }
 0x46e   :  { %607 = vlog2.f32 %v306_v62 }
 0x476   :  { %v606_v63 = vpop.eup %605 }
 0x477   :  { %v308_v1 = vmul.f32 0.6931472, %v606_v63 }
 0x478   :  { %v608_v2 = vpop.eup %607 }
 0x479   :  { %v311_v3 = vadd.f32 %v308_v1, %v294_v48  ;;  %v310_v4 = vmul.f32 0.6931472, %v608_v2 }
 0x47b   :  { %v312_v5 = vadd.f32 %v310_v4, %v296_v50  ;;  %v313_v6 = vsub.f32 %v287_v40, %v311_v3 }
 0x47d   :  { %v314_v7 = vsub.f32 %v290_v43, %v312_v5 }
 0x47f   :  { %v315_v8 = vpack.c.bf16 %v314_v7, %v313_v6 }
 0x481   :  { %560 = vmatmul.mubr.bf16.vlgmr.msra.gmra.mrb[4].mxu0 %v315_v8 }
 0x554   :  { %v421_v9 = vpop.f32.mrb[4].mxu0 }
 0x555   :  { %v422_v10 = vadd.f32 %v485_v0, %v421_v9  ;;  %v561_v11 = vpop.f32.mrb[5].mxu0 }
 0x556   :  { %v424_v12 = vpop.f32.mrb[6].mxu0 }
 0x557   :  { %v425_v13 = vadd.f32 %v485_v0, %v424_v12  ;;  %428 = vmax.xlane.f32.xlu0 %v422_v10  ;;  %v562_v14 = vpop.f32.mrb[7].mxu0 }
 0x559   :  { %430 = vmax.xlane.f32.xlu1 %v425_v13 }
 0x5e4   :  { %v429_v15 = vpop.xlane.xlu0 %428 }
 0x5e5   :  { %v432_v16 = vsub.f32 %v422_v10, %v429_v15 }
 0x5e6   :  { %v431_v17 = vpop.xlane.xlu1 %430 }
 0x5e7   :  { %v434_v18 = vmul.f32 1.442695, %v432_v16  ;;  %v433_v19 = vsub.f32 %v425_v13, %v431_v17 }
 0x5e9   :  { %609 = vpow2.f32 %v434_v18  ;;  %v436_v20 = vmul.f32 1.442695, %v433_v19 }
 0x5eb   :  { %611 = vpow2.f32 %v436_v20 }
 0x5f3   :  { %v610_v21 = vpop.eup %609 }
 0x5f4   :  { %438 = vadd.xlane.f32.xlu0 %v610_v21 }
 0x5f5   :  { %v612_v22 = vpop.eup %611 }
 0x5f6   :  { %440 = vadd.xlane.f32.xlu1 %v612_v22 }
 0x681   :  { %v439_v23 = vpop.xlane.xlu0 %438 }
 0x682   :  { %613 = vlog2.f32 %v439_v23 }
 0x683   :  { %v441_v24 = vpop.xlane.xlu1 %440 }
 0x684   :  { %615 = vlog2.f32 %v441_v24 }
 0x68c   :  { %v614_v25 = vpop.eup %613 }
 0x68d   :  { %v443_v26 = vmul.f32 0.6931472, %v614_v25 }
 0x68e   :  { %v616_v27 = vpop.eup %615 }
 0x68f   :  { %v446_v28 = vadd.f32 %v443_v26, %v429_v15  ;;  %v445_v29 = vmul.f32 0.6931472, %v616_v27 }
 0x691   :  { %v448_v30 = vsub.f32 %v422_v10, %v446_v28  ;;  %v447_v31 = vadd.f32 %v445_v29, %v431_v17 }
 0x693   :  { %450 = vst [vmem:[#allocation10] sm:$0xff] %v448_v30  ;;  %v449_v32 = vsub.f32 %v425_v13, %v447_v31 }
 0x695   :  { %451 = vst [vmem:[#allocation10 + $0x8] sm:$0xff] %v449_v32 }
 0x696   :  { %716 = shalt.err (!%p713_p8)
}
 0x697   :  { %s717_s9 = scalar_lea.hbm %s909_s7, 256 }
 0x698   :  { %p718_p9 = scmp.ne.s32.totalorder %s909_s7, %s717_s9  ;;  %p721_p10 = scmp.lt.u32.totalorder %s717_s9, %s909_s7 }
 0x69a   :  { %p723_p11 = pnand %p721_p10, %p718_p9 }
 0x69c   :  { %726 = shalt.err (!%p723_p11)
}
 0x69d   :  { %s744_s16 = smov 128   ;;  %s745_s0 = smov 8  }
 0x69e   :  { %463 = dma.vmem_to_hbm [thread:$0]  %s458_s28, 256, %s909_s7, [#allocation4], %s744_s16, %s744_s16, %s745_s0  }
 0x69f   :  { %733 = dma.done.wait [#allocation4], 256  }
 0x6a0   :  { %734 = vsyncadd [#allocation4], 4294967040 }
 0x6a1   :  { %467 = vsyncpa [#allocation3], 1 }
 0x6a2   :  { %468 = vsyncpa [#allocation6], 1 }
 0x6a3   :  { %469 = vsyncpa [#allocation9], 1 }
 0x6a4   :  { %470 = vsyncpa [#allocation4], 1 }

</bundles_post_ra>
